<compile_context>
chip_gen: v6e
topology: v6e:2x2x1
jax: 0.10.0
libtpu: 0.0.40
codegen_flags: <defaults>
</compile_context>

<pallas_src>
import functools

import jax
import jax.numpy as jnp
from jax.experimental import pallas as pl
from jax.experimental.pallas import tpu as pltpu


def word_ebd_kernel(x_ref, w_ref, shift_ref, o_ref):
    # MXU matmul on bf16 inputs, f32 accumulation.
    y = jnp.dot(x_ref[...], w_ref[...], preferred_element_type=jnp.float32)
    # Folded (bias + BatchNorm) shift, then tanh — all in f32 on VPU/EUP.
    o_ref[...] = jnp.tanh(y + shift_ref[...]).astype(o_ref.dtype)


def _round_up(x, m):
    return ((x + m - 1) // m) * m


@functools.partial(jax.jit, static_argnames=("eps", "tile_m"))
def word_ebd_forward(x, w_t, b, gamma, beta, running_mean, running_var,
                     eps=1e-5, tile_m=512):
    """Fused WordEbd forward (eval mode).

    x: (N, D_in) f32; w_t: (D_in, D_out) f32 (pre-transposed Linear weight);
    b/gamma/beta/running_mean/running_var: (D_out,) f32.
    """
    N, D_in = x.shape
    D_out = w_t.shape[1]

    # ---- Fold Linear bias + BatchNorm1d(eval) into the weight and one shift.
    # bn(x@W^T + b) = (x@W^T)*scale + (b - mean)*scale + beta,
    #   scale = gamma / sqrt(var + eps)
    inv_std = jax.lax.rsqrt(running_var + eps)
    scale = gamma * inv_std                                   # (D_out,)
    w_folded = (w_t * scale[None, :]).astype(jnp.bfloat16)    # (D_in, D_out)
    shift = ((b - running_mean) * scale + beta).reshape(1, D_out)
    shift = shift.astype(jnp.float32)

    # ---- Row tiling: big tiles, cdiv grid, pad the ragged tail.
    # Tile rounded to 16 (bf16 sublane packing); small N -> single block.
    tm = min(tile_m, _round_up(max(N, 1), 16))
    n_pad = _round_up(N, tm)
    x_b = x.astype(jnp.bfloat16)
    if n_pad != N:
        x_b = jnp.pad(x_b, ((0, n_pad - N), (0, 0)))

    grid = (n_pad // tm,)
    cost = pl.CostEstimate(
        flops=2 * n_pad * D_in * D_out,
        transcendentals=n_pad * D_out,
        bytes_accessed=(x_b.size * 2 + w_folded.size * 2
                        + shift.size * 4 + n_pad * D_out * 4),
    )

    out = pl.pallas_call(
        word_ebd_kernel,
        out_shape=jax.ShapeDtypeStruct((n_pad, D_out), jnp.float32),
        grid_spec=pltpu.PrefetchScalarGridSpec(
            num_scalar_prefetch=0,
            grid=grid,
            in_specs=[
                pl.BlockSpec((tm, D_in), lambda i: (i, 0)),    # x row tile
                pl.BlockSpec((D_in, D_out), lambda i: (0, 0)),  # folded weight
                pl.BlockSpec((1, D_out), lambda i: (0, 0)),     # folded shift
            ],
            out_specs=pl.BlockSpec((tm, D_out), lambda i: (i, 0)),
        ),
        compiler_params=pltpu.CompilerParams(
            dimension_semantics=("parallel",)),
        cost_estimate=cost,
    )(x_b, w_folded, shift)

    return out[:N]


def _ref_forward(x, w, b, gamma, beta, mean, var, eps=1e-5, bf16_inputs=True):
    """Pure-JAX reference of the eval-mode module semantics."""
    inv_std = 1.0 / jnp.sqrt(var + eps)
    scale = gamma * inv_std
    w_f = w.T * scale[None, :]
    shift = (b - mean) * scale + beta
    if bf16_inputs:  # match the kernel's bf16 MXU inputs exactly
        x = x.astype(jnp.bfloat16).astype(jnp.float32)
        w_f = w_f.astype(jnp.bfloat16).astype(jnp.float32)
    return jnp.tanh(x @ w_f + shift)


if __name__ == "__main__":
    # Small shapes consistent with the module: glove_dim=128, word_ebd_dim=128.
    GLOVE_DIM, WORD_EBD_DIM = 128, 128

    key = jax.random.PRNGKey(0)
    kx, kw, kb, kg, kbeta, km, kv, kx2 = jax.random.split(key, 8)

    w = jax.random.normal(kw, (WORD_EBD_DIM, GLOVE_DIM), dtype=jnp.float32) * 0.05
    b = jax.random.normal(kb, (WORD_EBD_DIM,), dtype=jnp.float32) * 0.01
    gamma = 1.0 + 0.1 * jax.random.normal(kg, (WORD_EBD_DIM,), dtype=jnp.float32)
    beta = 0.1 * jax.random.normal(kbeta, (WORD_EBD_DIM,), dtype=jnp.float32)
    running_mean = 0.1 * jax.random.normal(km, (WORD_EBD_DIM,), dtype=jnp.float32)
    running_var = jax.random.uniform(kv, (WORD_EBD_DIM,), dtype=jnp.float32,
                                     minval=0.5, maxval=1.5)
    w_t = w.T  # (GLOVE_DIM, WORD_EBD_DIM)

    # Case 1: tiny batch -> single block, no grid loop.
    x1 = jax.random.normal(kx, (8, GLOVE_DIM), dtype=jnp.float32)
    out1 = word_ebd_forward(x1, w_t, b, gamma, beta, running_mean, running_var)
    jax.block_until_ready(out1)
    ref1_bf16 = _ref_forward(x1, w, b, gamma, beta, running_mean, running_var)
    ref1_f32 = _ref_forward(x1, w, b, gamma, beta, running_mean, running_var,
                            bf16_inputs=False)
    assert out1.shape == (8, WORD_EBD_DIM)
    assert jnp.allclose(out1, ref1_bf16, atol=1e-3, rtol=1e-3)
    assert jnp.allclose(out1, ref1_f32, atol=3e-2, rtol=3e-2)

    # Case 2: non-multiple batch -> exercises cdiv grid + ragged-tail padding.
    x2 = jax.random.normal(kx2, (300, GLOVE_DIM), dtype=jnp.float32)
    out2 = word_ebd_forward(x2, w_t, b, gamma, beta, running_mean, running_var,
                            tile_m=128)
    jax.block_until_ready(out2)
    ref2_bf16 = _ref_forward(x2, w, b, gamma, beta, running_mean, running_var)
    ref2_f32 = _ref_forward(x2, w, b, gamma, beta, running_mean, running_var,
                            bf16_inputs=False)
    assert out2.shape == (300, WORD_EBD_DIM)
    assert jnp.allclose(out2, ref2_bf16, atol=1e-3, rtol=1e-3)
    assert jnp.allclose(out2, ref2_f32, atol=3e-2, rtol=3e-2)

    print("KERNEL_OK")
</pallas_src>

<mosaic_0001>
module attributes {stable_mosaic.version = 11 : i64} {
  func.func @word_ebd_kernel(%arg0: i32, %arg1: memref<16x128xbf16, #tpu.memory_space<vmem>>, %arg2: memref<128x128xbf16, #tpu.memory_space<vmem>>, %arg3: memref<1x128xf32, #tpu.memory_space<vmem>>, %arg4: memref<16x128xf32, #tpu.memory_space<vmem>>) attributes {dimension_semantics = [#tpu.dimension_semantics<parallel>], iteration_bounds = array<i64: 1>, scalar_prefetch = 0 : i64, scratch_operands = 0 : i64, tpu.core_type = #tpu.core_type<tc>, window_params = [{transform_indices = @transform_0, window_bounds = array<i64: 16, 128>}, {pipeline_mode = #tpu.pipeline_mode<synchronous>, transform_indices = @transform_1, window_bounds = array<i64: 128, 128>}, {pipeline_mode = #tpu.pipeline_mode<synchronous>, transform_indices = @transform_2, window_bounds = array<i64: 1, 128>}, {transform_indices = @transform_3, window_bounds = array<i64: 16, 128>}]} {
    %c0 = arith.constant 0 : index
    %c0_0 = arith.constant 0 : index
    %0 = vector.load %arg1[%c0, %c0_0] : memref<16x128xbf16, #tpu.memory_space<vmem>>, vector<16x128xbf16>
    %c0_1 = arith.constant 0 : index
    %c0_2 = arith.constant 0 : index
    %1 = vector.load %arg2[%c0_1, %c0_2] : memref<128x128xbf16, #tpu.memory_space<vmem>>, vector<128x128xbf16>
    %cst = arith.constant dense<0.000000e+00> : vector<16x128xf32>
    %2 = tpu.matmul %0, %1, %cst {dimension_numbers = #tpu.dot_dimension_numbers<[1], [0], [0], [1], [0, 0, 1, 1], [], []>} : vector<16x128xbf16>, vector<128x128xbf16>, vector<16x128xf32> -> vector<16x128xf32>
    %c0_3 = arith.constant 0 : index
    %c0_4 = arith.constant 0 : index
    %3 = vector.load %arg3[%c0_3, %c0_4] : memref<1x128xf32, #tpu.memory_space<vmem>>, vector<1x128xf32>
    %4 = vector.broadcast %3 : vector<1x128xf32> to vector<16x128xf32>
    %5 = arith.addf %2, %4 : vector<16x128xf32>
    %6 = math.tanh %5 : vector<16x128xf32>
    %c0_5 = arith.constant 0 : index
    %c0_6 = arith.constant 0 : index
    %7 = vector.load %arg4[%c0_5, %c0_6] : memref<16x128xf32, #tpu.memory_space<vmem>>, vector<16x128xf32>
    tpu.vector_store %arg4[%c0_5, %c0_6], %6 {strides = array<i32>} : memref<16x128xf32, #tpu.memory_space<vmem>>, vector<16x128xf32>,
    return
  }
  func.func @transform_0(%arg0: i32) -> (i32, i32) {
    %c0_i32 = arith.constant 0 : i32
    %c0_i32_0 = arith.constant 0 : i32
    return %arg0, %c0_i32 : i32, i32
  }
  func.func @transform_1(%arg0: i32) -> (i32, i32) {
    %c0_i32 = arith.constant 0 : i32
    %c0_i32_0 = arith.constant 0 : i32
    %c0_i32_1 = arith.constant 0 : i32
    return %c0_i32, %c0_i32_0 : i32, i32
  }
  func.func @transform_2(%arg0: i32) -> (i32, i32) {
    %c0_i32 = arith.constant 0 : i32
    %c0_i32_0 = arith.constant 0 : i32
    %c0_i32_1 = arith.constant 0 : i32
    return %c0_i32, %c0_i32_0 : i32, i32
  }
  func.func @transform_3(%arg0: i32) -> (i32, i32) {
    %c0_i32 = arith.constant 0 : i32
    %c0_i32_0 = arith.constant 0 : i32
    return %arg0, %c0_i32 : i32, i32
  }
}

</mosaic_0001>

<bundles_post_ra>
// kernel: word_ebd_forward.1
= control target key start
LH: loop header
LB: loop body
LE: loop exit
PB: predicated region body
PF: predicated region fallthrough
CT: control target
= control target key end

     0   :  { %v197_v0 = vmov 0.0   ;;  %vm198_vm0 = vmmov 0   ;;  %s255_s1 = inlined_call_operand.vmem [shape: bf16[128,128], index: 1, kind: input, shape index: {}]   ;;  %s256_s0 = inlined_call_operand.vmem [shape: bf16[16,128], index: 0, kind: input, shape index: {}]   ;;  %s257_s2 = inlined_call_operand.vmem [shape: f32[1,128], index: 2, kind: input, shape index: {}]   ;;  %s258_s3 = inlined_call_operand.vmem [shape: f32[16,128], index: 3, kind: output, shape index: {}]  }
   0x1   :  { %162 = vmatprep.subr.bf16.mxu0 %v197_v0  ;;  %v184_v1 = vld [vmem:[%s255_s1 + $0x38] sm:$0xff]   ;;  %178 = vmatprep.mubr.msk.bf16.mxu0 %vm198_vm0, %v197_v0  ;;  %v185_v2 = vld [vmem:[%s255_s1 + $0x30] sm:$0xff]   ;;  %v186_v3 = vld [vmem:[%s255_s1 + $0x28] sm:$0xff]  }
   0x2   :  { %163 = vmatpush3.bf16.msra.mxu0 %v184_v1  ;;  %v187_v4 = vld [vmem:[%s255_s1 + $0x20] sm:$0xff]   ;;  %v188_v5 = vld [vmem:[%s255_s1 + $0x18] sm:$0xff]   ;;  %v189_v6 = vld [vmem:[%s255_s1 + $0x10] sm:$0xff]  }
   0x3   :  { %164 = vmatprep.subr.bf16.mxu0 %v197_v0  ;;  %v190_v7 = vld [vmem:[%s255_s1 + $0x8] sm:$0xff]   ;;  %v191_v8 = vld [vmem:[%s255_s1] sm:$0xff]  }
   0x4   :  { %v192_v9 = vld [vmem:[%s256_s0] sm:$0xff]  }
   0x5   :  { %v143_v10 = vld [vmem:[%s257_s2] ss:$0 sm:$0xff] }
   0x6   :  { %165 = vmatpush3.bf16.msra.mxu0 %v185_v2 }
   0x7   :  { %166 = vmatprep.subr.bf16.mxu0 %v197_v0 }
   0xa   :  { %167 = vmatpush3.bf16.msra.mxu0 %v186_v3 }
   0xb   :  { %168 = vmatprep.subr.bf16.mxu0 %v197_v0 }
   0xe   :  { %169 = vmatpush3.bf16.msra.mxu0 %v187_v4 }
   0xf   :  { %170 = vmatprep.subr.bf16.mxu0 %v197_v0 }
  0x12   :  { %171 = vmatpush3.bf16.msra.mxu0 %v188_v5 }
  0x13   :  { %172 = vmatprep.subr.bf16.mxu0 %v197_v0 }
  0x16   :  { %173 = vmatpush3.bf16.msra.mxu0 %v189_v6 }
  0x17   :  { %174 = vmatprep.subr.bf16.mxu0 %v197_v0 }
  0x1a   :  { %175 = vmatpush3.bf16.msra.mxu0 %v190_v7 }
  0x1b   :  { %176 = vmatprep.subr.bf16.mxu0 %v197_v0 }
  0x1e   :  { %177 = vmatpush3.bf16.msra.mxu0 %v191_v8 }
  0x21   :  { %179 = vmatmul.mubr.bf16.vlgmr.msra.gmra.mxu0 %v192_v9 }
  0xe1   :  { %v128_v11 = vpop.f32.mrf.mxu0 }
  0xe2   :  { %v129_v12 = vadd.f32 %v143_v10, %v128_v11 }
  0xe3   :  { %v180_v13 = vpop.f32.mrf.mxu0 }
  0xe4   :  { %193 = vtanh.f32 %v129_v12 }
  0xe5   :  { %v131_v14 = vpop.f32.mrf.mxu0 }
  0xe6   :  { %v132_v15 = vadd.f32 %v143_v10, %v131_v14 }
  0xe7   :  { %v181_v16 = vpop.f32.mrf.mxu0 }
  0xe8   :  { %195 = vtanh.f32 %v132_v15 }
  0xf1   :  { %v194_v17 = vpop.eup %193 }
  0xf2   :  { %137 = vst [vmem:[%s258_s3] sm:$0xff] %v194_v17 }
  0xf5   :  { %v196_v18 = vpop.eup %195 }
  0xf6   :  { %138 = vst [vmem:[%s258_s3 + $0x8] sm:$0xff] %v196_v18 }

</bundles_post_ra>
